<compile_context>
chip_gen: v5e
topology: v5e:2x2
jax: 0.10.0
libtpu: 0.0.40
codegen_flags: <defaults>
</compile_context>

<pallas_src>
import functools

import jax
import jax.numpy as jnp
from jax.experimental import pallas as pl
from jax.experimental.pallas import tpu as pltpu


def _cat_slice_cat_kernel(*refs, tails):
    """out = concat([inputs..., inputs[:, :size] split across inputs], axis=1).

    All segment widths are static Python ints; the row block is assembled once
    in vregs and written back with a single lane-dense store.
    """
    in_refs = refs[:-1]
    out_ref = refs[-1]

    parts = [r[...] for r in in_refs]          # main concat segments
    for r, t in zip(in_refs, tails):           # tail slice t1[:, 0:size]
        if t > 0:
            parts.append(r[:, 0:t])

    out_ref[...] = jnp.concatenate(parts, axis=1) if len(parts) > 1 else parts[0]


def cat_slice_cat(size, tensors1, tensors2, tensors3):
    """Pallas implementation of Model.forward (cat -> slice -> cat)."""
    inputs = [tensors1, tensors2, tensors3]
    n = tensors1.shape[0]
    assert all(t.shape[0] == n for t in inputs), "batch dims must match"
    dtype = tensors1.dtype

    # Drop zero-width inputs (would otherwise create 0-sized block dims).
    inputs = [t for t in inputs if t.shape[1] > 0]
    widths = [t.shape[1] for t in inputs]
    ctot = sum(widths)

    # TODO(synk): `size` must be a static Python int here (matches the
    # PyTorch-constant pattern); a traced `size` would need a different design.
    size = max(0, min(int(size), ctot))        # PyTorch slicing clips the bound
    out_cols = ctot + size

    if ctot == 0:
        return jnp.zeros((n, 0), dtype=dtype)

    # Static split of the tail slice [0:size) across the surviving inputs.
    tails = []
    remaining = size
    for w in widths:
        t = min(remaining, w)
        tails.append(t)
        remaining -= t

    # ---- Row-tile sizing -------------------------------------------------
    itemsize = jnp.dtype(dtype).itemsize
    sub = max(8, 32 // itemsize)               # native sublane multiple: 8/16/32
    bytes_per_row = itemsize * (ctot + out_cols)   # input tiles + output tile

    # Total double-buffered footprint target ~20 MiB; explicit vmem limit of
    # 32 MiB keeps this legal on v5e (16 MiB scoped default) and within the
    # v7x 32 MiB scoped / 64 MiB physical budget.
    vmem_budget = 20 << 20
    vmem_limit = 32 << 20

    tm = vmem_budget // (2 * bytes_per_row)
    tm = max(sub, (tm // sub) * sub)

    if tm >= n:
        if n >= 2 * sub:
            # Whole array would fit in one step: split rows in two so the
            # "parallel" axis can shard across both v7x TensorCores.
            half = pl.cdiv(n, 2)
            tm = min(n, ((half + sub - 1) // sub) * sub)
        else:
            tm = n                             # full-extent row block (legal)

    grid = (pl.cdiv(n, tm),)

    kernel = functools.partial(_cat_slice_cat_kernel, tails=tuple(tails))

    in_specs = [
        pl.BlockSpec((tm, w), lambda i: (i, 0)) for w in widths
    ]
    out_spec = pl.BlockSpec((tm, out_cols), lambda i: (i, 0))

    return pl.pallas_call(
        kernel,
        out_shape=jax.ShapeDtypeStruct((n, out_cols), dtype),
        grid=grid,
        in_specs=in_specs,
        out_specs=out_spec,
        compiler_params=pltpu.CompilerParams(
            dimension_semantics=("parallel",),
            vmem_limit_bytes=vmem_limit,
        ),
    )(*inputs)


class Model:
    """JAX/Pallas port of the PyTorch Model."""

    def __init__(self, key):
        # Conv2d(3, 8, kernel_size=1, stride=1, padding=1) parameters —
        # initialized deterministically; unused in forward (matches PyTorch).
        kw, kb = jax.random.split(key)
        fan_in = 3 * 1 * 1
        bound = 1.0 / (fan_in ** 0.5)
        self.conv_weight = jax.random.uniform(
            kw, (8, 3, 1, 1), jnp.float32, minval=-bound, maxval=bound
        )
        self.conv_bias = jax.random.uniform(
            kb, (8,), jnp.float32, minval=-bound, maxval=bound
        )

    def forward(self, size, tensors1, tensors2, tensors3):
        return cat_slice_cat(size, tensors1, tensors2, tensors3)


def _reference(size, a, b, c):
    t1 = jnp.concatenate([a, b, c], axis=1)
    t2 = t1[:, 0:9223372036854775807]
    t3 = t2[:, 0:size]
    return jnp.concatenate([t1, t3], axis=1)


if __name__ == "__main__":
    key = jax.random.PRNGKey(0)
    k0, k1, k2, k3 = jax.random.split(key, 4)

    model = Model(k0)

    # Small, shape-consistent example inputs: batch=4, per-tensor features=32.
    size = 1  # matches the module-level `size = 1`
    n, c = 4, 32
    tensors1 = jax.random.normal(k1, (n, c), jnp.float32)
    tensors2 = jax.random.normal(k2, (n, c), jnp.float32)
    tensors3 = jax.random.normal(k3, (n, c), jnp.float32)

    out = model.forward(size, tensors1, tensors2, tensors3)
    out = jax.block_until_ready(out)

    ref = _reference(size, tensors1, tensors2, tensors3)
    assert out.shape == (n, 3 * c + size), out.shape
    assert jnp.allclose(out, ref), "mismatch vs reference"

    # Case where the slice spans tensors2/tensors3 and the row count forces a
    # multi-step grid / partial last block.
    size2 = 2 * c + 5
    n2 = 1040
    a2 = jax.random.normal(k1, (n2, c), jnp.float32)
    b2 = jax.random.normal(k2, (n2, c), jnp.float32)
    c2 = jax.random.normal(k3, (n2, c), jnp.float32)
    out2 = jax.block_until_ready(model.forward(size2, a2, b2, c2))
    ref2 = _reference(size2, a2, b2, c2)
    assert out2.shape == ref2.shape, out2.shape
    assert jnp.allclose(out2, ref2), "mismatch vs reference (spanning slice)"

    # bf16 path (exercises dtype-aware sublane rounding).
    a3 = a2.astype(jnp.bfloat16)
    b3 = b2.astype(jnp.bfloat16)
    c3 = c2.astype(jnp.bfloat16)
    out3 = jax.block_until_ready(model.forward(size, a3, b3, c3))
    ref3 = _reference(size, a3, b3, c3)
    assert out3.shape == ref3.shape, out3.shape
    assert jnp.allclose(out3.astype(jnp.float32), ref3.astype(jnp.float32)), \
        "mismatch vs reference (bf16)"

    print("KERNEL_OK")
</pallas_src>

<mosaic_0001>
module attributes {stable_mosaic.version = 11 : i64} {
  func.func @_cat_slice_cat_kernel(%arg0: i32, %arg1: memref<4x32xf32, #tpu.memory_space<vmem>>, %arg2: memref<4x32xf32, #tpu.memory_space<vmem>>, %arg3: memref<4x32xf32, #tpu.memory_space<vmem>>, %arg4: memref<4x97xf32, #tpu.memory_space<vmem>>) attributes {dimension_semantics = [#tpu.dimension_semantics<parallel>], iteration_bounds = array<i64: 1>, scalar_prefetch = 0 : i64, scratch_operands = 0 : i64, tpu.core_type = #tpu.core_type<tc>, window_params = [{transform_indices = @transform_0, window_bounds = array<i64: 4, 32>}, {transform_indices = @transform_1, window_bounds = array<i64: 4, 32>}, {transform_indices = @transform_2, window_bounds = array<i64: 4, 32>}, {transform_indices = @transform_3, window_bounds = array<i64: 4, 97>}]} {
    %c0 = arith.constant 0 : index
    %c0_0 = arith.constant 0 : index
    %0 = vector.load %arg1[%c0, %c0_0] : memref<4x32xf32, #tpu.memory_space<vmem>>, vector<4x32xf32>
    %c0_1 = arith.constant 0 : index
    %c0_2 = arith.constant 0 : index
    %1 = vector.load %arg2[%c0_1, %c0_2] : memref<4x32xf32, #tpu.memory_space<vmem>>, vector<4x32xf32>
    %c0_3 = arith.constant 0 : index
    %c0_4 = arith.constant 0 : index
    %2 = vector.load %arg3[%c0_3, %c0_4] : memref<4x32xf32, #tpu.memory_space<vmem>>, vector<4x32xf32>
    %c0_5 = arith.constant 0 : index
    %c0_6 = arith.constant 0 : index
    %3 = vector.load %arg1[%c0_5, %c0_6] : memref<4x32xf32, #tpu.memory_space<vmem>>, vector<4x1xf32>
    %4 = tpu.concatenate %0, %1, %2, %3 in 1 : vector<4x32xf32>, vector<4x32xf32>, vector<4x32xf32>, vector<4x1xf32> -> vector<4x97xf32>
    %c0_7 = arith.constant 0 : index
    %c0_8 = arith.constant 0 : index
    %5 = vector.load %arg4[%c0_7, %c0_8] : memref<4x97xf32, #tpu.memory_space<vmem>>, vector<4x97xf32>
    tpu.vector_store %arg4[%c0_7, %c0_8], %4 {strides = array<i32>} : memref<4x97xf32, #tpu.memory_space<vmem>>, vector<4x97xf32>,
    return
  }
  func.func @transform_0(%arg0: i32) -> (i32, i32) {
    %c0_i32 = arith.constant 0 : i32
    %c0_i32_0 = arith.constant 0 : i32
    return %arg0, %c0_i32 : i32, i32
  }
  func.func @transform_1(%arg0: i32) -> (i32, i32) {
    %c0_i32 = arith.constant 0 : i32
    %c0_i32_0 = arith.constant 0 : i32
    return %arg0, %c0_i32 : i32, i32
  }
  func.func @transform_2(%arg0: i32) -> (i32, i32) {
    %c0_i32 = arith.constant 0 : i32
    %c0_i32_0 = arith.constant 0 : i32
    return %arg0, %c0_i32 : i32, i32
  }
  func.func @transform_3(%arg0: i32) -> (i32, i32) {
    %c0_i32 = arith.constant 0 : i32
    %c0_i32_0 = arith.constant 0 : i32
    return %arg0, %c0_i32 : i32, i32
  }
}

</mosaic_0001>

<bundles_post_ra>
// kernel: tpu_custom_call.1
= control target key start
LH: loop header
LB: loop body
LE: loop exit
PB: predicated region body
PF: predicated region fallthrough
CT: control target
= control target key end

     0   :  { %8 = vsyncpa [#allocation3], 0  ;;  %s245_s0 = inlined_call_operand.hbm [shape: f32[4,32], index: 0, kind: input, shape index: {}]   ;;  %s246_s1 = inlined_call_operand.hbm [shape: f32[4,32], index: 1, kind: input, shape index: {}]   ;;  %s247_s2 = inlined_call_operand.hbm [shape: f32[4,32], index: 2, kind: input, shape index: {}]   ;;  %s248_s3 = inlined_call_operand.hbm [shape: f32[4,97], index: 3, kind: output, shape index: {}]  }
   0x1   :  { %9 = vsyncpa [#allocation6], 0  ;;  %s27_s14 = sshll.u32 %s246_s1, 4  ;;  %s28_s14 = int_to_ptr.hbm [resolvable:$true] %s27_s14 }
   0x2   :  { %10 = vsyncpa [#allocation4], 0  ;;  %s206_s15 = smov [#allocation5]   ;;  %s16_s19 = sshll.u32 %s245_s0, 4  ;;  %s17_s19 = int_to_ptr.hbm [resolvable:$true] %s16_s19 }
   0x3   :  { %s29_s16 = sshll.u32 %s206_s15, 4  ;;  %s207_s20 = smov [#allocation2]   ;;  %s30_s16 = int_to_ptr.vmem [resolvable:$true] %s29_s16 }
   0x4   :  { %32 = dma.hbm_to_vmem [thread:$0]  %s28_s14, 64, %s30_s16, [#allocation6]  }
   0x5   :  { %s18_s21 = sshll.u32 %s207_s20, 4  ;;  %s38_s24 = sshll.u32 %s247_s2, 4  ;;  %s19_s21 = int_to_ptr.vmem [resolvable:$true] %s18_s21  ;;  %s39_s24 = int_to_ptr.hbm [resolvable:$true] %s38_s24 }
   0x6   :  { %21 = dma.hbm_to_vmem [thread:$0]  %s17_s19, 64, %s19_s21, [#allocation3]  }
   0x7   :  { %s208_s1 = smov [#allocation7]  }
   0x8   :  { %s40_s25 = sshll.u32 %s208_s1, 4  ;;  %s41_s25 = int_to_ptr.vmem [resolvable:$true] %s40_s25 }
   0x9   :  { %43 = dma.hbm_to_vmem [thread:$0]  %s39_s24, 64, %s41_s25, [#allocation6]  }
   0xa   :  { %200 = dma.done.wait [#allocation3], 64  }
   0xb   :  { %201 = vsyncadd [#allocation3], 4294967232 }
   0xc   :  { %202 = dma.done.wait [#allocation6], 128  }
   0xd   :  { %203 = vsyncadd [#allocation6], 4294967168  ;;  %v57_v0 = vld [vmem:[#allocation5] sm:$0xf]  ;;  %v56_v1 = vld [vmem:[#allocation2] sm:$0xf] }
   0xe   :  { %s209_s0 = smov 32   ;;  %s210_s26 = smov 96   ;;  %v58_v2 = vld [vmem:[#allocation7] sm:$0xf]  ;;  %vm71_vm0 = vcmask 261120   ;;  %vm73_vm1 = vcmask 523264  }
   0xf   :  { %60 = vrot.lane.b32.xlu0 %v57_v0, %s209_s0  ;;  %68 = vrot.lane.b32.xlu1 %v56_v1, %s210_s26  ;;  %s211_s27 = smov 64   ;;  %s212_s2 = smov [#allocation8]   ;;  %vm75_vm2 = vcmask 785408   ;;  %vm77_vm3 = vcmask 789504  }
  0x10   :  { %s84_s28 = sshll.u32 %s212_s2, 4  ;;  %s86_s4 = sshll.u32 %s248_s3, 4  ;;  %s85_s28 = int_to_ptr.vmem [resolvable:$true] %s84_s28  ;;  %s87_s4 = int_to_ptr.hbm [resolvable:$true] %s86_s4 }
  0x17   :  { %64 = vrot.lane.b32.xlu0 %v58_v2, %s211_s27 }
  0x81   :  { %v61_v3 = vpop.permute.xlu0 %60  ;;  %v69_v4 = vpop.permute.xlu1 %68 }
  0x82   :  { %v72_v5 = vsel %vm71_vm0, %v56_v1, %v61_v3 }
  0x89   :  { %v65_v6 = vpop.permute.xlu0 %64 }
  0x8a   :  { %v74_v7 = vsel %vm73_vm1, %v72_v5, %v65_v6 }
  0x8b   :  { %v76_v8 = vsel %vm75_vm2, %v74_v7, %v69_v4 }
  0x8c   :  { %78 = vst.msk [vmem:[#allocation8] sm:$0xf] %vm77_vm3, %v76_v8 }
  0x8d   :  { %89 = dma.vmem_to_hbm [thread:$0]  %s85_s28, 64, %s87_s4, [#allocation4]  }
  0x8e   :  { %204 = dma.done.wait [#allocation4], 64  }
  0x8f   :  { %205 = vsyncadd [#allocation4], 4294967232 }
  0x90   :  { %94 = vsyncpa [#allocation3], 1 }
  0x91   :  { %95 = vsyncpa [#allocation6], 1 }
  0x92   :  { %96 = vsyncpa [#allocation4], 1 }

</bundles_post_ra>
